<compile_context>
chip_gen: v7x
topology: tpu7x:2x2x1
jax: 0.10.0
libtpu: 0.0.40
codegen_flags: <defaults>
</compile_context>

<pallas_src>
import functools

import jax
import jax.numpy as jnp
from jax.experimental import pallas as pl
from jax.experimental.pallas import tpu as pltpu


_VMEM_LIMIT = 32 * 1024 * 1024          # explicit scoped-VMEM request (safe on v5e/v6e/v7x)
_FUSED_BLOCK_LIMIT = 3 * 1024 * 1024    # max per-batch (C, H*W) block for the fused path
_TILE_BYTES_TARGET = 2 * 1024 * 1024    # ~2 MiB x tiles in the tiled fallback
_MAX_SPATIAL_TILE = 2048
_MAX_ROW_TILE = 512


def _round_down(x, m):
    return (x // m) * m


def _sublane_multiple(dtype):
    """Minimum second-minor tile multiple: 8 (f32), 16 (bf16), 32 (int8/fp8)."""
    return max(8, 32 // jnp.dtype(dtype).itemsize)


# ---------------------------------------------------------------------------
# Fused kernel: squeeze -> excite -> scale for one batch element per grid step.
# ---------------------------------------------------------------------------
def _fused_se_kernel(x_ref, w1t_ref, b1_ref, w2t_ref, b2_ref, o_ref, *, inv_hw):
    x = x_ref[...]                                                      # (C, HW) native dtype
    # Squeeze: f32 spatial mean per channel (XLU lane reduction).
    s = jnp.sum(x.astype(jnp.float32), axis=-1, keepdims=True) * inv_hw  # (C, 1)
    # Excite: tiny MLP.  Weights pre-transposed -> plain (out,in)@(in,1) dots.
    h = jnp.dot(w1t_ref[...], s, preferred_element_type=jnp.float32,
                precision=jax.lax.Precision.HIGHEST) + b1_ref[...]       # (Cr, 1)
    h = jnp.maximum(h, 0.0)
    z = jnp.dot(w2t_ref[...], h, preferred_element_type=jnp.float32,
                precision=jax.lax.Precision.HIGHEST) + b2_ref[...]       # (C, 1)
    e = jax.nn.sigmoid(z).astype(x.dtype)                                # (C, 1)
    # Scale: broadcast once along the 128-lane axis, multiply in input dtype.
    o_ref[...] = x * e


# ---------------------------------------------------------------------------
# Tiled fallback, pass 1: per-(b, c) spatial sum accumulated in f32.
# ---------------------------------------------------------------------------
def _squeeze_kernel(x_ref, s_ref, *, thw, hw, need_mask):
    j = pl.program_id(1)
    x = x_ref[...].astype(jnp.float32)
    if need_mask:  # ragged spatial edge: zero out-of-bounds lanes before summing
        col = jax.lax.broadcasted_iota(jnp.int32, x.shape, 1) + j * thw
        x = jnp.where(col < hw, x, 0.0)
    part = jnp.sum(x, axis=-1, keepdims=True)

    @pl.when(j == 0)
    def _():
        s_ref[...] = part

    @pl.when(j > 0)
    def _():
        s_ref[...] += part


# ---------------------------------------------------------------------------
# Tiled fallback, pass 2: x * e, pure streaming pass in the input dtype.
# ---------------------------------------------------------------------------
def _scale_kernel(x_ref, e_ref, o_ref):
    o_ref[...] = x_ref[...] * e_ref[...]


def se_block(x_nchw, w1, b1, w2, b2, *, force_tiled=False):
    """SEBlock forward.  x: (B, C, H, W); w1: (C, Cr); b1: (Cr,); w2: (Cr, C); b2: (C,)."""
    B, C, H, W = x_nchw.shape
    Cr = w1.shape[1]
    hw = H * W
    dtype = x_nchw.dtype
    itemsize = jnp.dtype(dtype).itemsize
    sub = _sublane_multiple(dtype)

    block_bytes = C * hw * itemsize
    use_fused = (not force_tiled) and (block_bytes <= _FUSED_BLOCK_LIMIT)

    if use_fused:
        # ------------------ single fused kernel, grid over batch ------------------
        # Pre-transpose weights / column-shape biases once (tiny, outside kernel).
        w1t = jnp.asarray(w1, jnp.float32).T            # (Cr, C)
        w2t = jnp.asarray(w2, jnp.float32).T            # (C, Cr)
        b1c = jnp.asarray(b1, jnp.float32).reshape(Cr, 1)
        b2c = jnp.asarray(b2, jnp.float32).reshape(C, 1)
        x3d = x_nchw.reshape(B, C, hw)

        out = pl.pallas_call(
            functools.partial(_fused_se_kernel, inv_hw=1.0 / hw),
            out_shape=jax.ShapeDtypeStruct((B, C, hw), dtype),
            grid=(B,),
            in_specs=[
                pl.BlockSpec((None, C, hw), lambda b: (b, 0, 0)),
                pl.BlockSpec((Cr, C), lambda b: (0, 0)),
                pl.BlockSpec((Cr, 1), lambda b: (0, 0)),
                pl.BlockSpec((C, Cr), lambda b: (0, 0)),
                pl.BlockSpec((C, 1), lambda b: (0, 0)),
            ],
            out_specs=pl.BlockSpec((None, C, hw), lambda b: (b, 0, 0)),
            compiler_params=pltpu.CompilerParams(
                dimension_semantics=("parallel",),
                vmem_limit_bytes=_VMEM_LIMIT),
        )(x3d, w1t, b1c, w2t, b2c)
        return out.reshape(B, C, H, W)

    # ------------------ tiled 2-pass fallback (big per-batch block) ------------------
    rows = B * C
    x2d = x_nchw.reshape(rows, hw)

    # Spatial tile: prefer an exact divisor (no edge mask); never fall back to an
    # unbounded full dim — cap at _MAX_SPATIAL_TILE with a cdiv grid + in-kernel mask.
    if hw <= _MAX_SPATIAL_TILE:
        thw = hw                                        # full-extent block (always legal)
    else:
        thw = _MAX_SPATIAL_TILE
        for cand in (2048, 1536, 1024, 768, 512, 384, 256, 128):
            if hw % cand == 0:
                thw = cand
                break
    need_mask = (hw % thw) != 0

    # Row tile: dtype-aware sublane multiple, capped so (a) the x tile stays
    # ~<= 2 MiB and (b) the row axis has >= 4 slices when possible (v7x megacore).
    if rows <= sub:
        tr = rows                                        # full-dim block (always legal)
    else:
        tr = min(_MAX_ROW_TILE, max(sub, _round_down(rows // 4, sub)))
        cap = max(sub, _round_down(_TILE_BYTES_TARGET // (thw * itemsize), sub))
        tr = min(tr, cap)
    grid = (pl.cdiv(rows, tr), pl.cdiv(hw, thw))

    # Pass 1: spatial sums (f32), reduction axis last, marked "arbitrary".
    sums = pl.pallas_call(
        functools.partial(_squeeze_kernel, thw=thw, hw=hw, need_mask=need_mask),
        out_shape=jax.ShapeDtypeStruct((rows, 1), jnp.float32),
        grid=grid,
        in_specs=[pl.BlockSpec((tr, thw), lambda i, j: (i, j))],
        out_specs=pl.BlockSpec((tr, 1), lambda i, j: (i, 0)),
        compiler_params=pltpu.CompilerParams(
            dimension_semantics=("parallel", "arbitrary"),
            vmem_limit_bytes=_VMEM_LIMIT),
    )(x2d)

    # Excitation MLP on the tiny (B, C) vector in plain XLA (FLOPs are noise next
    # to the HBM traffic; a dedicated pallas_call only added launch/serialization).
    s = sums.reshape(B, C) * jnp.float32(1.0 / hw)
    w1f = jnp.asarray(w1, jnp.float32)
    w2f = jnp.asarray(w2, jnp.float32)
    h = jnp.maximum(
        jnp.dot(s, w1f, precision=jax.lax.Precision.HIGHEST) + jnp.asarray(b1, jnp.float32), 0.0)
    e = jax.nn.sigmoid(
        jnp.dot(h, w2f, precision=jax.lax.Precision.HIGHEST) + jnp.asarray(b2, jnp.float32))
    e_rows = e.astype(dtype).reshape(rows, 1)            # cast once; halves e DMA for bf16 x

    # Pass 2: streaming x * e, both grid axes parallel (megacore-shardable).
    out = pl.pallas_call(
        _scale_kernel,
        out_shape=jax.ShapeDtypeStruct((rows, hw), dtype),
        grid=grid,
        in_specs=[
            pl.BlockSpec((tr, thw), lambda i, j: (i, j)),
            pl.BlockSpec((tr, 1), lambda i, j: (i, 0)),
        ],
        out_specs=pl.BlockSpec((tr, thw), lambda i, j: (i, j)),
        compiler_params=pltpu.CompilerParams(
            dimension_semantics=("parallel", "parallel"),
            vmem_limit_bytes=_VMEM_LIMIT),
    )(x2d, e_rows)
    return out.reshape(B, C, H, W)


def se_block_ref(x, w1, b1, w2, b2):
    """Pure-JAX reference mirroring the PyTorch SEBlock semantics."""
    s = jnp.mean(x.astype(jnp.float32), axis=(2, 3))                      # AdaptiveAvgPool2d(1)
    h = jnp.maximum(jnp.dot(s, w1, precision=jax.lax.Precision.HIGHEST) + b1, 0.0)
    e = jax.nn.sigmoid(jnp.dot(h, w2, precision=jax.lax.Precision.HIGHEST) + b2)
    return x * e[:, :, None, None].astype(x.dtype)


if __name__ == "__main__":
    # channels must be divisible by reduction_ratio=8 -> C=32 (hidden=4);
    # H=W=16 so H*W=256 is a lane-dense multiple of 128.
    B, C, H, W = 2, 32, 16, 16
    reduction_ratio = 8
    Cr = C // reduction_ratio

    key = jax.random.PRNGKey(0)
    kx, k1, kb1, k2, kb2 = jax.random.split(key, 5)

    x = jax.random.normal(kx, (B, C, H, W), dtype=jnp.float32)

    # Deterministic PyTorch-Linear-style uniform init.
    bound1 = 1.0 / (C ** 0.5)
    w1 = jax.random.uniform(k1, (C, Cr), jnp.float32, -bound1, bound1)
    b1 = jax.random.uniform(kb1, (Cr,), jnp.float32, -bound1, bound1)
    bound2 = 1.0 / (Cr ** 0.5)
    w2 = jax.random.uniform(k2, (Cr, C), jnp.float32, -bound2, bound2)
    b2 = jax.random.uniform(kb2, (C,), jnp.float32, -bound2, bound2)

    y_ref = se_block_ref(x, w1, b1, w2, b2)

    # Primary fused path (per-batch block resident in VMEM, 1 read + 1 write of x).
    y = se_block(x, w1, b1, w2, b2)
    jax.block_until_ready(y)
    assert y.shape == (B, C, H, W)
    assert jnp.allclose(y, y_ref, atol=1e-4, rtol=1e-4)

    # Tiled fallback path, exercised explicitly so both code paths stay tested.
    y_tiled = se_block(x, w1, b1, w2, b2, force_tiled=True)
    jax.block_until_ready(y_tiled)
    assert jnp.allclose(y_tiled, y_ref, atol=1e-4, rtol=1e-4)

    print("KERNEL_OK")
</pallas_src>

<mosaic_0001>
module attributes {stable_mosaic.version = 11 : i64} {
  func.func @_fused_se_kernel(%arg0: i32, %arg1: memref<1x32x256xf32, #tpu.memory_space<vmem>>, %arg2: memref<4x32xf32, #tpu.memory_space<vmem>>, %arg3: memref<4x1xf32, #tpu.memory_space<vmem>>, %arg4: memref<32x4xf32, #tpu.memory_space<vmem>>, %arg5: memref<32x1xf32, #tpu.memory_space<vmem>>, %arg6: memref<1x32x256xf32, #tpu.memory_space<vmem>>) attributes {dimension_semantics = [#tpu.dimension_semantics<parallel>], iteration_bounds = array<i64: 2>, scalar_prefetch = 0 : i64, scratch_operands = 0 : i64, tpu.core_type = #tpu.core_type<tc>, window_params = [{transform_indices = @transform_0, window_bounds = array<i64: 1, 32, 256>}, {pipeline_mode = #tpu.pipeline_mode<synchronous>, transform_indices = @transform_1, window_bounds = array<i64: 4, 32>}, {pipeline_mode = #tpu.pipeline_mode<synchronous>, transform_indices = @transform_2, window_bounds = array<i64: 4, 1>}, {pipeline_mode = #tpu.pipeline_mode<synchronous>, transform_indices = @transform_3, window_bounds = array<i64: 32, 4>}, {pipeline_mode = #tpu.pipeline_mode<synchronous>, transform_indices = @transform_4, window_bounds = array<i64: 32, 1>}, {transform_indices = @transform_5, window_bounds = array<i64: 1, 32, 256>}]} {
    %c0 = arith.constant 0 : index
    %c0_0 = arith.constant 0 : index
    %c0_1 = arith.constant 0 : index
    %0 = vector.load %arg1[%c0, %c0_0, %c0_1] : memref<1x32x256xf32, #tpu.memory_space<vmem>>, vector<1x32x256xf32>
    %1 = vector.shape_cast %0 : vector<1x32x256xf32> to vector<32x256xf32>
    %cst = arith.constant dense<0.000000e+00> : vector<32xf32>
    %2 = vector.multi_reduction <add>, %1, %cst [1] : vector<32x256xf32> to vector<32xf32>
    %3 = vector.shape_cast %2 : vector<32xf32> to vector<32x1xf32>
    %cst_2 = arith.constant 3.906250e-03 : f32
    %4 = vector.broadcast %cst_2 : f32 to vector<32x1xf32>
    %5 = arith.mulf %3, %4 : vector<32x1xf32>
    %c0_3 = arith.constant 0 : index
    %c0_4 = arith.constant 0 : index
    %6 = vector.load %arg2[%c0_3, %c0_4] : memref<4x32xf32, #tpu.memory_space<vmem>>, vector<4x32xf32>
    %cst_5 = arith.constant dense<0.000000e+00> : vector<4x1xf32>
    %7 = tpu.matmul %6, %5, %cst_5 {dimension_numbers = #tpu.dot_dimension_numbers<[1], [0], [0], [1], [0, 0, 1, 1], [], []>, precision = #tpu.contract_precision<fp32>} : vector<4x32xf32>, vector<32x1xf32>, vector<4x1xf32> -> vector<4x1xf32>
    %c0_6 = arith.constant 0 : index
    %c0_7 = arith.constant 0 : index
    %8 = vector.load %arg3[%c0_6, %c0_7] : memref<4x1xf32, #tpu.memory_space<vmem>>, vector<4x1xf32>
    %9 = arith.addf %7, %8 : vector<4x1xf32>
    %cst_8 = arith.constant 0.000000e+00 : f32
    %10 = vector.broadcast %cst_8 : f32 to vector<4x1xf32>
    %11 = arith.maximumf %9, %10 : vector<4x1xf32>
    %c0_9 = arith.constant 0 : index
    %c0_10 = arith.constant 0 : index
    %12 = vector.load %arg4[%c0_9, %c0_10] : memref<32x4xf32, #tpu.memory_space<vmem>>, vector<32x4xf32>
    %cst_11 = arith.constant dense<0.000000e+00> : vector<32x1xf32>
    %13 = tpu.matmul %12, %11, %cst_11 {dimension_numbers = #tpu.dot_dimension_numbers<[1], [0], [0], [1], [0, 0, 1, 1], [], []>, precision = #tpu.contract_precision<fp32>} : vector<32x4xf32>, vector<4x1xf32>, vector<32x1xf32> -> vector<32x1xf32>
    %c0_12 = arith.constant 0 : index
    %c0_13 = arith.constant 0 : index
    %14 = vector.load %arg5[%c0_12, %c0_13] : memref<32x1xf32, #tpu.memory_space<vmem>>, vector<32x1xf32>
    %15 = arith.addf %13, %14 : vector<32x1xf32>
    %16 = arith.negf %15 : vector<32x1xf32>
    %17 = math.exp %16 : vector<32x1xf32>
    %cst_14 = arith.constant 1.000000e+00 : f32
    %18 = vector.broadcast %cst_14 : f32 to vector<32x1xf32>
    %19 = arith.addf %18, %17 : vector<32x1xf32>
    %20 = arith.divf %18, %19 : vector<32x1xf32>
    %21 = vector.broadcast %20 : vector<32x1xf32> to vector<32x256xf32>
    %22 = arith.mulf %1, %21 : vector<32x256xf32>
    %c0_15 = arith.constant 0 : index
    %c0_16 = arith.constant 0 : index
    %c0_17 = arith.constant 0 : index
    %23 = vector.load %arg6[%c0_15, %c0_16, %c0_17] : memref<1x32x256xf32, #tpu.memory_space<vmem>>, vector<1x32x256xf32>
    %24 = vector.shape_cast %23 : vector<1x32x256xf32> to vector<32x256xf32>
    %25 = vector.shape_cast %22 : vector<32x256xf32> to vector<1x32x256xf32>
    tpu.vector_store %arg6[%c0_15, %c0_16, %c0_17], %25 {strides = array<i32>} : memref<1x32x256xf32, #tpu.memory_space<vmem>>, vector<1x32x256xf32>,
    return
  }
  func.func @transform_0(%arg0: i32) -> (i32, i32, i32) {
    %c0_i32 = arith.constant 0 : i32
    %c0_i32_0 = arith.constant 0 : i32
    %c0_i32_1 = arith.constant 0 : i32
    return %arg0, %c0_i32, %c0_i32_0 : i32, i32, i32
  }
  func.func @transform_1(%arg0: i32) -> (i32, i32) {
    %c0_i32 = arith.constant 0 : i32
    %c0_i32_0 = arith.constant 0 : i32
    %c0_i32_1 = arith.constant 0 : i32
    return %c0_i32, %c0_i32_0 : i32, i32
  }
  func.func @transform_2(%arg0: i32) -> (i32, i32) {
    %c0_i32 = arith.constant 0 : i32
    %c0_i32_0 = arith.constant 0 : i32
    %c0_i32_1 = arith.constant 0 : i32
    return %c0_i32, %c0_i32_0 : i32, i32
  }
  func.func @transform_3(%arg0: i32) -> (i32, i32) {
    %c0_i32 = arith.constant 0 : i32
    %c0_i32_0 = arith.constant 0 : i32
    %c0_i32_1 = arith.constant 0 : i32
    return %c0_i32, %c0_i32_0 : i32, i32
  }
  func.func @transform_4(%arg0: i32) -> (i32, i32) {
    %c0_i32 = arith.constant 0 : i32
    %c0_i32_0 = arith.constant 0 : i32
    %c0_i32_1 = arith.constant 0 : i32
    return %c0_i32, %c0_i32_0 : i32, i32
  }
  func.func @transform_5(%arg0: i32) -> (i32, i32, i32) {
    %c0_i32 = arith.constant 0 : i32
    %c0_i32_0 = arith.constant 0 : i32
    %c0_i32_1 = arith.constant 0 : i32
    return %arg0, %c0_i32, %c0_i32_0 : i32, i32, i32
  }
}

</mosaic_0001>

<bundles_post_ra>
// kernel: tpu_custom_call.1
= control target key start
LH: loop header
LB: loop body
LE: loop exit
PB: predicated region body
PF: predicated region fallthrough
CT: control target
= control target key end

     0   :  { %10 = vsyncpa [#allocation3], 0  ;;  %s2245_s0 = inlined_call_operand.hbm [shape: f32[2,32,256], index: 0, kind: input, shape index: {}]   ;;  %s2246_s1 = inlined_call_operand.vmem [shape: f32[4,32], index: 1, kind: input, shape index: {}]   ;;  %s2247_s2 = inlined_call_operand.vmem [shape: f32[4,1], index: 2, kind: input, shape index: {}]   ;;  %s2248_s3 = inlined_call_operand.vmem [shape: f32[32,4], index: 3, kind: input, shape index: {}]   ;;  %s2249_s4 = inlined_call_operand.vmem [shape: f32[32,1], index: 4, kind: input, shape index: {}]   ;;  %s2250_s5 = inlined_call_operand.hbm [shape: f32[2,32,256], index: 5, kind: output, shape index: {}]  }
   0x1   :  { %12 = vsyncpa [#allocation3 + $0x1], 0 }
   0x2   :  { %13 = vsyncpa [#allocation4], 0 }
   0x3   :  { %15 = vsyncpa [#allocation4 + $0x1], 0  ;;  %s1981_s18 = smov 0   ;;  %s1983_s19 = smov 0  }
   0x4   :  { %s1985_s20 = smov 0   ;;  %s1987_s21 = smov 0  }
   0x5 LB: > { %s2002_s22 = sadd.s32 4294967295, %s1939_s21   ;;  %s1506_s23 = sadd.s32 4294967294, %s1939_s21   ;;  %s1939_s21 = sphi %s1987_s21, %s2263_s21   ;;  %s1935_s20 = sphi %s1985_s20, %s2262_s20   ;;  %s1931_s19 = sphi %s1983_s19, %s2261_s19   ;;  %s1927_s18 = sphi %s1981_s18, %s2260_s18  }
   0x6   : > { %s2006_s24 = sadd.s32 1, %s1939_s21   ;;  %s28_s25 = sadd.s32 1, %s1935_s20 }
   0x7   : > { %s25_s26 = ssub.s32 %s1939_s21, %s2006_s24  ;;  %p35_p0 = scmp.ne.s32.totalorder %s1935_s20, %s1931_s19 }
   0x8   : > { %p26_p1 = scmp.eq.s32.totalorder %s25_s26, 0  ;;  %p36_p2 = scmp.eq.s32.totalorder %s1939_s21, 0 }
   0x9   : > { %p41_p3 = scmp.ne.s32.totalorder %s1931_s19, %s1927_s18  ;;  %p42_p4 = scmp.eq.s32.totalorder %s2002_s22, 0 }
   0xa   : > { %s2018_s27 = scalar_select %p26_p1, %s1935_s20, %s28_s25  }
   0xb   : > { %p2020_p5 = por %p36_p2, %p35_p0  ;;  %p2024_p6 = por %p42_p4, %p41_p3 }
   0xc   : > { %p149_p7 = scmp.eq.s32.totalorder %s2002_s22, 1  ;;  %p155_p8 = scmp.eq.s32.totalorder %s1506_s23, 1 }
   0xd   : > { %p1783_p10 = scmp.lt.s32.totalorder %s1939_s21, 2  ;;  %s187_s7 = sand.u32 1, %s1935_s20  }
   0xe   : > { %p2031_p11 = por %p149_p7, %p35_p0  ;;  %p2035_p12 = por %p155_p8, %p41_p3 }
   0xf   : > { %s1524_s8 = sshll.u32 %s1939_s21, 10  ;;  %s1509_s9 = sshll.u32 %s187_s7, 6 }
  0x10   : > { %s2254_s30 = scalar_select %p2031_p11, 1, 0 }
  0x11   : > { %s2255_s6 = scalar_select %p2035_p12, 1, 0 }
  0x12   : > { %s2044_s12 = scalar_lea.hbm %s2245_s0, %s1524_s8  ;;  %s191_s13 = scalar_lea.vmem [#allocation2], %s1509_s9 }
  0x13   : > { %s198_s14 = sshll.u32 %s191_s13, 4  ;;  %p2048_p13 = pnand %p1783_p10, %p2020_p5  ;;  %s2052_s14 = int_to_ptr.vmem [resolvable:$true] %s198_s14 }
  0x14   : > { %s2054_s16 = scalar_lea.sflag [#allocation3], %s187_s7  ;;  %s1843_s17 = scalar_lea.hbm %s2044_s12, 1024 }
  0x15   : > { %p1844_p0 = scmp.ne.s32.totalorder %s2044_s12, %s1843_s17  ;;  %p1845_p1 = pneg %p2048_p13 }
  0x16   : > { %s1848_s26 = scalar_lea.hbm %s2245_s0, 2048  ;;  %p1849_p4 = scmp.lt.u32.totalorder %s2044_s12, %s2245_s0 }
  0x17   : > { %p1846_p2 = pnand %p1845_p1, %p1844_p0  ;;  %p1850_p5 = scmp.lt.u32.totalorder %s1848_s26, %s1843_s17 }
  0x18   : > { %p1852_p8 = scmp.lt.u32.totalorder %s1843_s17, %s2044_s12 }
  0x19   : > { %p1847_p3 = pneg %p1846_p2  ;;  %p1851_p7 = por %p1850_p5, %p1849_p4 }
  0x1b   : > { %p1853_p10 = por %p1852_p8, %p1851_p7 }
  0x1d   : > { %p1854_p9 = pnand %p1853_p10, %p1847_p3 }
  0x1f   : > { %1857 = shalt.err (!%p1854_p9)
}
  0x20   : > { %s1858_s7 = scalar_lea.vmem %s2052_s14, 1024  ;;  %s1941_s9 = smov [#allocation2]  }
  0x21   : > { %p1859_p0 = scmp.ne.s32.totalorder %s2052_s14, %s1858_s7  ;;  %s1863_s10 = sshll.u32 %s1941_s9, 4  ;;  %s1864_s10 = int_to_ptr.vmem [resolvable:$false] %s1863_s10 }
  0x22   : > { %s1865_s11 = scalar_lea.vmem %s1864_s10, 2048  ;;  %p1866_p11 = scmp.lt.s32.totalorder %s2052_s14, %s1864_s10 }
  0x23   : > { %p1861_p2 = pnand %p1859_p0, %p1845_p1  ;;  %p1867_p4 = scmp.lt.s32.totalorder %s1865_s11, %s1858_s7 }
  0x25   : > { %p1862_p12 = pneg %p1861_p2  ;;  %p1868_p5 = por %p1867_p4, %p1866_p11 }
  0x27   : > { %p1869_p7 = pnand %p1868_p5, %p1862_p12 }
  0x29   : > { %1872 = shalt.err (!%p1869_p7)
}
  0x2a   : > { %s1942_s13 = smov 256   ;;  %s1943_s17 = smov 16  }
  0x2b   : > { %1778 = dma.hbm_to_vmem [thread:$0]  (!%p2048_p13), %s2044_s12, 1024, %s2052_s14, %s2054_s16, %s1942_s13, %s1942_s13, %s1943_s17  }
  0x2c   : > { %p1512_p9 = scmp.ge.s32.totalorder %s1939_s21, 1  ;;  %p206_p1 = scmp.lt.s32.totalorder %s1939_s21, 3 }
  0x2e   : > { %p207_p3 = pnand %p1512_p9, %p206_p1 }
  0x2f   : > { %s2085_s23 = sand.u32 (!%p207_p3), 1, %s1931_s19  }
  0x30   : > { %210 = sbr.rel (%p207_p3) target bundleno = 914 (0x392), region = 40  ;;  %s1513_s25 = sshll.u32 (!%p207_p3), %s2085_s23, 6 }
  0x31   : > { %s213_s26 = scalar_lea.sflag (!%p207_p3), [#allocation3], %s2085_s23  ;;  %s216_s28 = scalar_lea.vmem (!%p207_p3), [#allocation2], %s1513_s25 }
  0x37   : > { %1918 = dma.done.wait (%p2024_p6), %s213_s26, 1024  }
  0x38   : > { %1920 = vsyncadd (%p2024_p6), %s213_s26, 4294966272  ;;  %v2095_v0 = vld [vmem:[%s216_s28 + $0x20] sm:$0xff]  ;;  %v2097_v1 = vld [vmem:[%s216_s28 + $0x28] sm:$0xff]  ;;  %v1944_v12 = vmov 0.0|0.0   ;;  %vm1945_vm0 = vmmov 0   ;;  %v1946_v13 = vmov 0.0  }
  0x39   : > { %v2099_v2 = vld [vmem:[%s216_s28] sm:$0xff]  ;;  %v257_v3 = vadd.f32 %v2097_v1, %v2095_v0  ;;  %v2103_v4 = vld [vmem:[%s216_s28 + $0x8] sm:$0xff]  ;;  %v2105_v5 = vld [vmem:[%s216_s28 + $0x30] sm:$0xff]  ;;  %1700 = vmatprep.subr.bf16.mxu0 %v1944_v12  ;;  %1594 = vmatprep.mubr.msk.f32.mxu0 %vm1945_vm0, %v1946_v13  ;;  %vm269_vm1 = vcmask 261120   ;;  %vm767_vm2 = vcmask 31744   ;;  %vm780_vm3 = vcmask 1043456  }
  0x3a   : > { %v2107_v6 = vld [vmem:[%s216_s28 + $0x38] sm:$0xff]  ;;  %v251_v7 = vadd.f32 %v2103_v4, %v2099_v2  ;;  %v2111_v8 = vld [vmem:[%s216_s28 + $0x10] sm:$0xff]  ;;  %v267_v14 = vld [vmem:[%s2246_s1] sm:$0xf]  ;;  %s242_s7 = scalar_lea.vmem [#allocation5], %s1513_s25  ;;  %s1525_s10 = sshll.u32 %s2002_s22, 10 }
  0x3b   : > { %v2113_v9 = vld [vmem:[%s216_s28 + $0x18] sm:$0xff]  ;;  %258 = vadd.xlane.f32.xlu1 %v257_v3  ;;  %v260_v10 = vadd.f32 %v2107_v6, %v2105_v5  ;;  %v271_v15 = vsel %vm269_vm1, %v267_v14, 0  ;;  %v759_v57 = vld [vmem:[%s2248_s3] sm:$0xff]  ;;  %v760_v3 = vld [vmem:[%s2248_s3 + $0x8] sm:$0xff]  ;;  %s1433_s9 = sshll.u32 %s242_s7, 4  ;;  %s2199_s13 = scalar_lea.hbm %s2250_s5, %s1525_s10  ;;  %s2194_s9 = int_to_ptr.vmem [resolvable:$true] %s1433_s9 }
  0x3c   : > { %252 = vadd.xlane.f32.xlu0 %v251_v7  ;;  %v254_v11 = vadd.f32 %v2113_v9, %v2111_v8  ;;  %v2125_v16 = vand.u32 4294901760, %v271_v15  ;;  %v769_v58 = vsel %vm767_vm2, %v759_v57, 0  ;;  %v761_v7 = vld [vmem:[%s2248_s3 + $0x10] sm:$0xff]  ;;  %s1420_s22 = scalar_lea.sflag [#allocation4], %s2085_s23  ;;  %s1873_s17 = scalar_lea.vmem %s2194_s9, 1024 }
  0x3d   : > { %v2155_v59 = vand.u32 4294901760, %v769_v58  ;;  %p1874_p6 = scmp.ne.s32.totalorder %s2194_s9, %s1873_s17  ;;  %p2257_p11 = scmp.ne.s32.totalorder %s2254_s30, 0 }
  0x3e   : > { %v343_v21 = vsub.f32 %v271_v15, %v2125_v16  ;;  %s1948_s26 = smov [#allocation5]  }
  0x3f   : > { %261 = vadd.xlane.f32.xlu1 %v260_v10  ;;  %v851_v60 = vsub.f32 %v769_v58, %v2155_v59  ;;  %v772_v10 = vsel %vm767_vm2, %v760_v3, 0  ;;  %p1875_p12 = pnand %p1874_p6, %p2257_p11  ;;  %s1877_s28 = sshll.u32 %s1948_s26, 4  ;;  %s1878_s28 = int_to_ptr.vmem [resolvable:$false] %s1877_s28 }
  0x40   : > { %255 = vadd.xlane.f32.xlu0 %v254_v11  ;;  %v344_v30 = vand.u32 4294901760, %v343_v21  ;;  %v775_v11 = vsel %vm767_vm2, %v761_v7, 0  ;;  %s1879_s29 = scalar_lea.vmem %s1878_s28, 2048  ;;  %p1880_p8 = scmp.lt.s32.totalorder %s2194_s9, %s1878_s28 }
  0x41   : > { %v852_v61 = vand.u32 4294901760, %v851_v60  ;;  %v870_v14 = vand.u32 4294901760, %v775_v11  ;;  %p1876_p13 = pneg %p1875_p12  ;;  %p1881_p10 = scmp.lt.s32.totalorder %s1879_s29, %s1873_s17 }
  0x42   : > { %v345_v38 = vsub.f32 %v343_v21, %v344_v30 }
  0x43   : > { %v853_v62 = vsub.f32 %v851_v60, %v852_v61  ;;  %p1882_p0 = por %p1881_p10, %p1880_p8 }
  0x44   : > { %v346_v45 = vand.u32 4294901760, %v345_v38 }
  0x45   : > { %v854_v63 = vand.u32 4294901760, %v853_v62  ;;  %p1883_p2 = pnand %p1882_p0, %p1876_p13 }
  0x47   : > { %1654 = vmatprep.mubr.f32.mxu1 %v854_v63 }
  0xc8   : > { %v259_v17 = vpop.xlane.xlu1 %258 }
  0xc9   : > { %v265_v18 = vmul.f32 0.00390625, %v259_v17  ;;  %v253_v19 = vpop.xlane.xlu0 %252 }
  0xca   : > { %v263_v20 = vmul.f32 0.00390625, %v253_v19  ;;  %v268_v19 = vld [vmem:[%s2247_s2] sm:$0xf] }
  0xcb   : > { %v280_v22 = vand.u32 4294901760, %v265_v18 }
  0xcc   : > { %v274_v23 = vand.u32 4294901760, %v263_v20  ;;  %v262_v24 = vpop.xlane.xlu1 %261 }
  0xcd   : > { %v266_v25 = vmul.f32 0.00390625, %v262_v24  ;;  %v256_v26 = vpop.xlane.xlu0 %255  ;;  %v368_v31 = vsub.f32 %v265_v18, %v280_v22  ;;  %v871_v18 = vsub.f32 %v775_v11, %v870_v14 }
  0xce   : > { %v354_v27 = vsub.f32 %v263_v20, %v274_v23  ;;  %v264_v28 = vmul.f32 0.00390625, %v256_v26 }
  0xcf   : > { %v283_v29 = vand.u32 4294901760, %v266_v25  ;;  %v369_v39 = vand.u32 4294901760, %v368_v31 }
  0xd0   : > { %v355_v32 = vand.u32 4294901760, %v354_v27  ;;  %v277_v33 = vand.u32 4294901760, %v264_v28 }
  0xd1   : > { %v375_v34 = vsub.f32 %v266_v25, %v283_v29  ;;  %v1704_v44 = vpack.c.bf16 %v283_v29, %v280_v22  ;;  %v370_v46 = vsub.f32 %v368_v31, %v369_v39  ;;  %v872_v22 = vand.u32 4294901760, %v871_v18 }
  0xd2   : > { %v361_v35 = vsub.f32 %v264_v28, %v277_v33  ;;  %v1701_v36 = vpack.c.bf16 %v277_v33, %v274_v23  ;;  %v356_v40 = vsub.f32 %v354_v27, %v355_v32 }
  0xd3   : > { %v376_v37 = vand.u32 4294901760, %v375_v34  ;;  %v371_v51 = vand.u32 4294901760, %v370_v46  ;;  %v1716_v54 = vpack.c.bf16 %v375_v34, %v368_v31  ;;  %v873_v29 = vsub.f32 %v871_v18, %v872_v22 }
  0xd4   : > { %v362_v41 = vand.u32 4294901760, %v361_v35  ;;  %1702 = vmatpush3.bf16.msra.mxu0 %v1701_v36  ;;  %v357_v47 = vand.u32 4294901760, %v356_v40  ;;  %v1713_v53 = vpack.c.bf16 %v361_v35, %v354_v27  ;;  %v1947_v40 = vmov 0  }
  0xd5   : > { %1703 = vmatprep.subr.bf16.mxu0 %v1944_v12  ;;  %v377_v42 = vsub.f32 %v375_v34, %v376_v37  ;;  %v1728_v56 = vpack.c.bf16 %v376_v37, %v369_v39  ;;  %v874_v34 = vand.u32 4294901760, %v873_v29  ;;  %1826 = vset.pattern.permute.xlu1 %v1947_v40 }
  0xd6   : > { %v363_v43 = vsub.f32 %v361_v35, %v362_v41  ;;  %v1725_v55 = vpack.c.bf16 %v362_v41, %v355_v32  ;;  %1825 = vset.pattern.permute.xlu0 %v1947_v40  ;;  %v764_v41 = vld [vmem:[%s2249_s4 + $0x8] sm:$0xff] }
  0xd7   : > { %v378_v49 = vand.u32 4294901760, %v377_v42  ;;  %v763_v42 = vld [vmem:[%s2249_s4] sm:$0xff] }
  0xd8   : > { %v364_v48 = vand.u32 4294901760, %v363_v43  ;;  %1705 = vmatpush3.bf16.msra.mxu0 %v1704_v44 }
  0xd9   : > { %1706 = vmatprep.subr.bf16.mxu0 %v1944_v12  ;;  %v1710_v52 = vpack.c.bf16 %v378_v49, %v371_v51  ;;  %v765_v49 = vld [vmem:[%s2249_s4 + $0x10] sm:$0xff] }
  0xda   : > { %v1707_v50 = vpack.c.bf16 %v364_v48, %v357_v47  ;;  %v766_v47 = vld [vmem:[%s2249_s4 + $0x18] sm:$0xff] }
  0xdb   : > { %1595 = vmatmul.mubr.f32.vlgmr.msra.gmra.mrb[0].mxu0 %v346_v45 }
  0xdc   : > { %1708 = vmatpush3.bf16.msra.mxu0 %v1707_v50  ;;  %1605 = vmatprep.mubr.msk.f32.mxu0 %vm1945_vm0, %v1946_v13 }
  0xdd   : > { %1709 = vmatprep.subr.bf16.mxu0 %v1944_v12 }
  0xe0   : > { %1711 = vmatpush3.bf16.msra.mxu0 %v1710_v52 }
  0xe1   : > { %1712 = vmatprep.subr.bf16.mxu0 %v1944_v12 }
  0xe3   : > { %1606 = vmatmul.mubr.f32.vlgmr.msra.gmra.mrb[0].mxu0 %v2125_v16 }
  0xe4   : > { %1714 = vmatpush3.bf16.msra.mxu0 %v1713_v53  ;;  %1616 = vmatprep.mubr.msk.f32.mxu0 %vm1945_vm0, %v1946_v13 }
  0xe5   : > { %1715 = vmatprep.subr.bf16.mxu0 %v1944_v12 }
  0xe8   : > { %1717 = vmatpush3.bf16.msra.mxu0 %v1716_v54 }
  0xe9   : > { %1718 = vmatprep.subr.bf16.mxu0 %v1944_v12 }
  0xeb   : > { %1617 = vmatmul.mubr.f32.vlgmr.msra.gmra.mrb[0].mxu0 %v343_v21 }
  0xec   : > { %1720 = vmatpush3.bf16.msra.mxu0 %v1701_v36  ;;  %1627 = vmatprep.mubr.msk.f32.mxu0 %vm1945_vm0, %v1946_v13 }
  0xed   : > { %1721 = vmatprep.subr.bf16.mxu0 %v1944_v12 }
  0xf0   : > { %1723 = vmatpush3.bf16.msra.mxu0 %v1704_v44 }
  0xf1   : > { %1724 = vmatprep.subr.bf16.mxu0 %v1944_v12 }
  0xf3   : > { %1628 = vmatmul.mubr.f32.vlgmr.msra.gmra.mrb[0].mxu0 %v344_v30 }
  0xf4   : > { %1726 = vmatpush3.bf16.msra.mxu0 %v1725_v55  ;;  %1638 = vmatprep.mubr.msk.f32.mxu0 %vm1945_vm0, %v1946_v13 }
  0xf5   : > { %1727 = vmatprep.subr.bf16.mxu0 %v1944_v12 }
  0xf8   : > { %1729 = vmatpush3.bf16.msra.mxu0 %v1728_v56 }
  0xf9   : > { %1730 = vmatprep.subr.bf16.mxu0 %v1944_v12 }
  0xfb   : > { %1639 = vmatmul.mubr.f32.vlgmr.msra.gmra.mrb[0].mxu0 %v2125_v16 }
  0xfc   : > { %1732 = vmatpush3.bf16.msra.mxu0 %v1701_v36  ;;  %1649 = vmatprep.mubr.msk.f32.mxu0 %vm1945_vm0, %v1946_v13  ;;  %v860_v13 = vand.u32 4294901760, %v772_v10 }
  0xfd   : > { %1733 = vmatprep.subr.bf16.mxu0 %v1944_v12  ;;  %v762_v12 = vld [vmem:[%s2248_s3 + $0x18] sm:$0xff] }
  0xfe   : > { %v778_v15 = vsel %vm767_vm2, %v762_v12, 0 }
  0xff   : > { %v880_v17 = vand.u32 4294901760, %v778_v15 }
 0x100   : > { %1735 = vmatpush3.bf16.msra.mxu0 %v1704_v44 }
 0x101   : > { %v881_v21 = vsub.f32 %v778_v15, %v880_v17 }
 0x103   : > { %1650 = vmatmul.mubr.f32.vlgmr.msra.gmra.mrb[0].mxu0 %v2125_v16  ;;  %v861_v16 = vsub.f32 %v772_v10, %v860_v13  ;;  %v882_v27 = vand.u32 4294901760, %v881_v21 }
 0x105   : > { %v862_v20 = vand.u32 4294901760, %v861_v16  ;;  %v883_v33 = vsub.f32 %v881_v21, %v882_v27 }
 0x107   : > { %v863_v26 = vsub.f32 %v861_v16, %v862_v20  ;;  %v884_v36 = vand.u32 4294901760, %v883_v33 }
 0x109   : > { %v864_v32 = vand.u32 4294901760, %v863_v26 }
 0x1d6   : > { %v754_v23 = vpop.f32.mrb[0].mxu0 }
 0x1d7   : > { %v1736_v24 = vadd.f32 %v754_v23, %v268_v19  ;;  %v1651_v25 = vpop.f32.mrb[1].mxu0 }
 0x1d9   : > { %v758_v28 = vmax.f32 %v1736_v24, 0.0 }
 0x1db   : > { %v782_v30 = vsel %vm780_vm3, %v758_v28, 0 }
 0x1dc   : > { %v785_v31 = vand.u32 4294901760, %v782_v30 }
 0x1de   : > { %v892_v35 = vsub.f32 %v782_v30, %v785_v31  ;;  %1652 = vmatprep.subr.mxu1 %v785_v31 }
 0x1df   : > { %1653 = vmatpush3.msra.mxu1 %v785_v31 }
 0x1e0   : > { %1655 = vmatmul.mubr.f32.vlgmr.msra.gmra.mrb[0].mxu1 %v864_v32  ;;  %v893_v37 = vand.u32 4294901760, %v892_v35 }
 0x1e1   : > { %1657 = vmatprep.mubr.f32.mxu1 %v874_v34 }
 0x1e2   : > { %v894_v38 = vsub.f32 %v892_v35, %v893_v37 }
 0x1e4   : > { %1658 = vmatmul.mubr.f32.gmra.mrb[2].mxu1 %v884_v36  ;;  %v895_v39 = vand.u32 4294901760, %v894_v38 }
 0x1e5   : > { %1662 = vmatprep.mubr.f32.mxu1 %v2155_v59 }
 0x1e6   : > { %1660 = vmatprep.subr.mxu1 %v895_v39 }
 0x1e7   : > { %1661 = vmatpush3.msra.mxu1 %v895_v39 }
 0x1e8   : > { %1663 = vmatmul.mubr.f32.vlgmr.msra.gmra.mrb[0].mxu1 %v860_v13  ;;  %1668 = vmatprep.subr.mxu1 %v892_v35 }
 0x1e9   : > { %1669 = vmatpush3.msra.mxu1 %v892_v35  ;;  %1665 = vmatprep.mubr.f32.mxu1 %v870_v14 }
 0x1ea   : > { %1676 = vmatprep.subr.mxu1 %v785_v31 }
 0x1ec   : > { %1666 = vmatmul.mubr.f32.gmra.mrb[2].mxu1 %v880_v17 }
 0x1ed   : > { %1670 = vmatprep.mubr.f32.mxu1 %v851_v60 }
 0x1f0   : > { %1671 = vmatmul.mubr.f32.vlgmr.msra.gmra.mrb[0].mxu1 %v861_v16 }
 0x1f1   : > { %1677 = vmatpush3.msra.mxu1 %v785_v31  ;;  %1673 = vmatprep.mubr.f32.mxu1 %v871_v18 }
 0x1f2   : > { %1684 = vmatprep.subr.mxu1 %v893_v37 }
 0x1f4   : > { %1674 = vmatmul.mubr.f32.gmra.mrb[2].mxu1 %v881_v21 }
 0x1f5   : > { %1678 = vmatprep.mubr.f32.mxu1 %v852_v61 }
 0x1f8   : > { %1679 = vmatmul.mubr.f32.vlgmr.msra.gmra.mrb[0].mxu1 %v862_v20 }
 0x1f9   : > { %1685 = vmatpush3.msra.mxu1 %v893_v37  ;;  %1681 = vmatprep.mubr.f32.mxu1 %v872_v22 }
 0x1fa   : > { %1692 = vmatprep.subr.mxu1 %v785_v31 }
 0x1fc   : > { %1682 = vmatmul.mubr.f32.gmra.mrb[2].mxu1 %v882_v27 }
 0x1fd   : > { %1686 = vmatprep.mubr.f32.mxu1 %v2155_v59 }
 0x200   : > { %1687 = vmatmul.mubr.f32.vlgmr.msra.gmra.mrb[0].mxu1 %v860_v13 }
 0x201   : > { %1693 = vmatpush3.msra.mxu1 %v785_v31  ;;  %1689 = vmatprep.mubr.f32.mxu1 %v870_v14 }
 0x204   : > { %1690 = vmatmul.mubr.f32.gmra.mrb[2].mxu1 %v880_v17 }
 0x205   : > { %1694 = vmatprep.mubr.f32.mxu1 %v2155_v59 }
 0x208   : > { %1695 = vmatmul.mubr.f32.vlgmr.msra.gmra.mrb[0].mxu1 %v860_v13 }
 0x209   : > { %1697 = vmatprep.mubr.f32.mxu1 %v870_v14 }
 0x20c   : > { %1698 = vmatmul.mubr.f32.gmra.mrb[2].mxu1 %v880_v17 }
 0x2db   : > { %v1696_v43 = vpop.f32.mrb[0].mxu1 }
 0x2dc   : > { %v1737_v44 = vadd.f32 %v1696_v43, %v764_v41  ;;  %v1337_v45 = vpop.f32.mrb[1].mxu1 }
 0x2dd   : > { %v1738_v46 = vadd.f32 %v1337_v45, %v763_v42 }
 0x2de   : > { %v1516_v48 = vmul.f32 -1.442695, %v1737_v44 }
 0x2df   : > { %v1515_v50 = vmul.f32 -1.442695, %v1738_v46  ;;  %v1699_v51 = vpop.f32.mrb[2].mxu1 }
 0x2e0   : > { %1827 = vpow2.f32 %v1516_v48  ;;  %v1739_v52 = vadd.f32 %v1699_v51, %v766_v47  ;;  %v1349_v53 = vpop.f32.mrb[3].mxu1 }
 0x2e1   : > { %1829 = vpow2.f32 %v1515_v50  ;;  %v1740_v54 = vadd.f32 %v1349_v53, %v765_v49 }
 0x2e2   : > { %v1518_v55 = vmul.f32 -1.442695, %v1739_v52 }
 0x2e3   : > { %v1517_v56 = vmul.f32 -1.442695, %v1740_v54 }
 0x2e4   : > { %1831 = vpow2.f32 %v1518_v55 }
 0x2e5   : > { %1833 = vpow2.f32 %v1517_v56 }
 0x2ea   : > { %v1828_v57 = vpop.eup %1827 }
 0x2eb   : > { %v1830_v58 = vpop.eup %1829  ;;  %v1372_v59 = vadd.f32 1.0, %v1828_v57 }
 0x2ec   : > { %v1371_v60 = vadd.f32 1.0, %v1830_v58 }
 0x2ed   : > { %1835 = vrcp.f32 %v1372_v59 }
 0x2ee   : > { %v1832_v61 = vpop.eup %1831  ;;  %1837 = vrcp.f32 %v1371_v60 }
 0x2ef   : > { %v1834_v62 = vpop.eup %1833  ;;  %v1374_v3 = vadd.f32 1.0, %v1832_v61 }
 0x2f0   : > { %v1373_v63 = vadd.f32 1.0, %v1834_v62 }
 0x2f2   : > { %1839 = vrcp.f32 %v1373_v63 }
 0x2f3   : > { %1841 = vrcp.f32 %v1374_v3 }
 0x2f7   : > { %v1836_v7 = vpop.eup %1835 }
 0x2f8   : > { %v1838_v10 = vpop.eup %1837  ;;  %1390 = vperm.xlu1 %1826, %v1836_v7  }
 0x2f9   : > { %1385 = vperm.xlu0 %1825, %v1838_v10  }
 0x2fc   : > { %v1840_v11 = vpop.eup %1839 }
 0x2fd   : > { %1395 = vperm.xlu1 %1826, %v1840_v11   ;;  %v1842_v12 = vpop.eup %1841 }
 0x301   : > { %1400 = vperm.xlu1 %1826, %v1842_v12  }
 0x377   : > { %v1391_v13 = vpop.permute.xlu1 %1390 }
 0x378   : > { %v1405_v14 = vmul.f32 %v1391_v13, %v2111_v8  ;;  %v1406_v15 = vmul.f32 %v1391_v13, %v2113_v9  ;;  %v1386_v16 = vpop.permute.xlu0 %1385 }
 0x379   : > { %v1403_v17 = vmul.f32 %v1386_v16, %v2099_v2  ;;  %v1404_v18 = vmul.f32 %v1386_v16, %v2103_v4 }
 0x37a   : > { %1413 = vst [vmem:[%s242_s7 + $0x10] sm:$0xff] %v1405_v14  ;;  %1414 = vst [vmem:[%s242_s7 + $0x18] sm:$0xff] %v1406_v15 }
 0x37b   : > { %1411 = vst [vmem:[%s242_s7] sm:$0xff] %v1403_v17  ;;  %1412 = vst [vmem:[%s242_s7 + $0x8] sm:$0xff] %v1404_v18 }
 0x37c   : > { %v1396_v19 = vpop.permute.xlu1 %1395 }
 0x37d   : > { %v1407_v20 = vmul.f32 %v1396_v19, %v2095_v0  ;;  %v1408_v8 = vmul.f32 %v1396_v19, %v2097_v1 }
 0x37f   : > { %1415 = vst [vmem:[%s242_s7 + $0x20] sm:$0xff] %v1407_v20  ;;  %1416 = vst [vmem:[%s242_s7 + $0x28] sm:$0xff] %v1408_v8 }
 0x380   : > { %v1401_v2 = vpop.permute.xlu1 %1400 }
 0x381   : > { %v1409_v4 = vmul.f32 %v1401_v2, %v2105_v5  ;;  %v1410_v0 = vmul.f32 %v1401_v2, %v2107_v6 }
 0x383   : > { %1417 = vst [vmem:[%s242_s7 + $0x30] sm:$0xff] %v1409_v4  ;;  %1418 = vst [vmem:[%s242_s7 + $0x38] sm:$0xff] %v1410_v0 }
 0x384   : > { %1886 = shalt.err (!%p1883_p2)
}
 0x385   : > { %s1887_s12 = scalar_lea.hbm %s2199_s13, 1024  ;;  %s1891_s16 = scalar_lea.hbm %s2250_s5, 2048 }
 0x386   : > { %p1888_p4 = scmp.ne.s32.totalorder %s2199_s13, %s1887_s12  ;;  %p1892_p9 = scmp.lt.u32.totalorder %s2199_s13, %s2250_s5 }
 0x387   : > { %p1893_p1 = scmp.lt.u32.totalorder %s1891_s16, %s1887_s12  ;;  %p1895_p6 = scmp.lt.u32.totalorder %s1887_s12, %s2199_s13 }
 0x388   : > { %p1889_p5 = pnand %p1888_p4, %p2257_p11 }
 0x389   : > { %p1894_p3 = por %p1893_p1, %p1892_p9 }
 0x38a   : > { %p1890_p7 = pneg %p1889_p5 }
 0x38b   : > { %p1896_p12 = por %p1895_p6, %p1894_p3 }
 0x38d   : > { %p1897_p13 = pnand %p1896_p12, %p1890_p7 }
 0x38f   : > { %1900 = shalt.err (!%p1897_p13)
}
 0x390   : > { %s1949_s10 = smov 256   ;;  %s1950_s25 = smov 16  }
 0x391   : > { %1773 = dma.vmem_to_hbm [thread:$0]  (%p2257_p11), %s2194_s9, 1024, %s2199_s13, %s1420_s22, %s1949_s10, %s1949_s10, %s1950_s25  }
 0x392 PF: > { %s1448_s11 = sand.u32 1, %s1927_s18   ;;  %p2258_p8 = scmp.ne.s32.totalorder %s2255_s6, 0 }
 0x393   : > { %p2259_p10 = scmp.ge.s32.totalorder %s1939_s21, 2  ;;  %s1449_s17 = scalar_lea.sflag [#allocation4], %s1448_s11 }
 0x395   : > { %p1780_p0 = pnand %p2259_p10, %p2258_p8 }
 0x397   : > { %1922 = dma.done.wait (!%p1780_p0), %s1449_s17, 1024  }
 0x398   : > { %1924 = vsyncadd (!%p1780_p0), %s1449_s17, 4294966272  ;;  %p18_p2 = scmp.ge.s32.totalorder %s2006_s24, 4   ;;  %s2260_s18 = smov %s1931_s19 }
 0x399   : > { %s2261_s19 = smov %s1935_s20  ;;  %s2262_s20 = smov %s2018_s27 }
 0x39a   : > { %s2263_s21 = smov %s2006_s24  ;;  %20 = sbr.rel (!%p18_p2) target bundleno = 5 (0x5), region = 85 }
 0x3a1   :  { %1454 = vsyncpa [#allocation3], 1 }
 0x3a2   :  { %1456 = vsyncpa [#allocation3 + $0x1], 1 }
 0x3a3   :  { %1457 = vsyncpa [#allocation4], 1 }
 0x3a4   :  { %1459 = vsyncpa [#allocation4 + $0x1], 1 }

</bundles_post_ra>
